<compile_context>
chip_gen: v6e
topology: v6e:2x2x1
jax: 0.10.0
libtpu: 0.0.40
codegen_flags: <defaults>
</compile_context>

<pallas_src>
import numpy as np
import jax
import jax.numpy as jnp
from jax import lax
from jax.experimental import pallas as pl
from jax.experimental.pallas import tpu as pltpu

_EPS = 1e-5


def tfac_encoder_kernel(xt_ref,
                        w1_ref, o1_ref,
                        w2_ref, o2_ref,
                        w3_ref, o3_ref,
                        out_ref):
    """One grid step = TB batch elements, flattened to M = TB*L matmul rows.

    xt_ref : (TB, L, 3*Cp)   pre-packed layer-1 taps [x[t-1], x[t], x[t+1]]
    w1_ref : (3*Cp, 32)      layer-1 weights, taps packed along K, BN scale folded
    w2_ref : (3, 32, 64)     layer-2 per-tap weights, BN scale folded
    w3_ref : (3, 64, 128)    layer-3 per-tap weights, BN scale folded
    oN_ref : (1, Cout_N)     f32 additive offset (conv bias + BatchNorm shift)
    out_ref: (TB, 128)       pooled features (f32, lane-dense stores)
    """
    TB, L, K1 = xt_ref.shape
    M = TB * L
    cdt = w1_ref.dtype   # MXU operand dtype (bf16 by default, f32 optional)

    # ---- Layer 1: taps were pre-packed in the wrapper -> a single matmul. ----
    xt = xt_ref[...].reshape(M, K1)
    y = jnp.dot(xt, w1_ref[...], preferred_element_type=jnp.float32)
    h = jnp.maximum(y + o1_ref[...], 0.0)                        # (M, 32) f32

    # ---- Per-sequence edge masks, built once and reused by layers 2 & 3. ----
    pos = lax.broadcasted_iota(jnp.int32, (M, 1), 0) % L
    is_first = pos == 0          # position 0 -> no "prev" (conv zero padding)
    is_last = pos == (L - 1)     # last position -> no "next"

    def conv_bn_relu(h, w_ref, o_ref):
        # Shifted neighbours along the flattened length axis; the masks kill
        # both the conv zero-padding rows and batch-seam leakage.
        h_prev = jnp.where(is_first, 0.0, jnp.roll(h, 1, axis=0)).astype(cdt)
        h_next = jnp.where(is_last, 0.0, jnp.roll(h, -1, axis=0)).astype(cdt)
        hc = h.astype(cdt)
        # Three accumulated MXU matmuls (no lane-sparse concatenate).
        y = jnp.dot(h_prev, w_ref[0], preferred_element_type=jnp.float32)
        y = y + jnp.dot(hc, w_ref[1], preferred_element_type=jnp.float32)
        y = y + jnp.dot(h_next, w_ref[2], preferred_element_type=jnp.float32)
        return jnp.maximum(y + o_ref[...], 0.0)   # bias/BN offset + ReLU

    h = conv_bn_relu(h, w2_ref, o2_ref)           # (M, 64)
    h = conv_bn_relu(h, w3_ref, o3_ref)           # (M, 128)

    # ---- AdaptiveAvgPool1d(1) + Flatten: per-sequence mean over L. ----------
    out_ref[...] = (h.reshape(TB, L, 128).sum(axis=1) * (1.0 / L)
                    ).astype(out_ref.dtype)


def _round_up(x, m):
    return ((x + m - 1) // m) * m


def _vmem_capacity_bytes():
    """Physical VMEM per TensorCore; conservative fallback if unqueryable."""
    try:
        cap = int(getattr(pltpu.get_tpu_info(), "vmem_capacity_bytes", 0) or 0)
        return cap if cap > 0 else (64 << 20)
    except Exception:
        return 64 << 20          # safe on every generation (v7x has 64 MiB)


def _choose_batch_tile(B, L, Cp, itemsize, vmem_cap):
    """Largest TB dividing B whose per-step working set fits ~half of VMEM,
    with TB % 8 == 0 (or TB == B) for unmasked output stores, preferring a
    grid of >= 2 steps (v7x megacore sharding, DMA/compute overlap)."""
    budget = vmem_cap // 2
    per_row = (2 * 3 * Cp * itemsize          # double-buffered input taps
               + 2 * (32 + 64 + 128) * 4      # f32 activations + accumulators
               + 3 * (32 + 64) * itemsize     # shifted matmul operands (L2/L3)
               + 128 * 4)                     # pooled / misc headroom
    max_m = max(L, min(16384, budget // per_row))
    divs = [d for d in range(1, B + 1) if B % d == 0]
    fits = [d for d in divs if d * L <= max_m]
    if not fits:
        return 1  # TODO(synk): add an L-tiling path for very long sequences
    clean = [d for d in fits if d % 8 == 0 or d == B]
    cands = clean if clean else fits
    multi = [d for d in cands if B // d >= 2]
    return max(multi) if multi else max(cands)


def tfac_forward(x_ncl, params, compute_dtype=jnp.bfloat16):
    """x_ncl: (B, Cin, L) float32 (PyTorch NCL layout). Returns (B, 128) f32."""
    B, Cin, L = x_ncl.shape
    x_blc = jnp.transpose(x_ncl, (0, 2, 1)).astype(jnp.float32)   # (B, L, Cin)

    # Pad input channels to a multiple of 8 (padded weight rows are zero).
    Cp = _round_up(Cin, 8)
    if Cp != Cin:
        x_blc = jnp.pad(x_blc, ((0, 0), (0, 0), (0, Cp - Cin)))

    # Pre-pack the three layer-1 taps [x[t-1], x[t], x[t+1]] so the kernel
    # skips layer-1's rolls / edge selects entirely.
    x_prev = jnp.pad(x_blc, ((0, 0), (1, 0), (0, 0)))[:, :L]
    x_next = jnp.pad(x_blc, ((0, 0), (0, 1), (0, 0)))[:, 1:]
    x_taps = jnp.concatenate([x_prev, x_blc, x_next], axis=-1)    # (B, L, 3*Cp)
    x_taps = x_taps.astype(compute_dtype)

    itemsize = jnp.dtype(compute_dtype).itemsize
    vmem_cap = _vmem_capacity_bytes()
    TB = _choose_batch_tile(B, L, Cp, itemsize, vmem_cap)
    grid = (B // TB,) if B % TB == 0 else (pl.cdiv(B, TB),)

    # Fold the (eval-mode) BatchNorm scale into the conv weights; keep only the
    # additive offset (conv bias + BN shift) as an f32 vector per layer.
    packed = []
    chans = [Cp, 32, 64]
    for li, (w, bias, gamma, beta, mean, var) in enumerate(params):
        cout, cin, _k = w.shape
        scale = gamma / jnp.sqrt(var + _EPS)                      # (Cout,)
        offset = ((bias - mean) * scale + beta).reshape(1, cout).astype(jnp.float32)
        w_k = jnp.transpose(w, (2, 1, 0))                         # (3, Cin, Cout)
        if chans[li] != cin:                                      # layer-1 Cin pad
            w_k = jnp.pad(w_k, ((0, 0), (0, chans[li] - cin), (0, 0)))
        w_k = (w_k * scale[None, None, :]).astype(compute_dtype)
        if li == 0:
            w_k = w_k.reshape(3 * chans[li], cout)                # taps packed on K
        packed.append((w_k, offset))
    (w1, o1), (w2, o2), (w3, o3) = packed

    const2d = lambda b: (0, 0)
    const3d = lambda b: (0, 0, 0)
    in_specs = [
        pl.BlockSpec((TB, L, 3 * Cp), lambda b: (b, 0, 0)),
        pl.BlockSpec(w1.shape, const2d), pl.BlockSpec(o1.shape, const2d),
        pl.BlockSpec(w2.shape, const3d), pl.BlockSpec(o2.shape, const2d),
        pl.BlockSpec(w3.shape, const3d), pl.BlockSpec(o3.shape, const2d),
    ]
    # NOTE: weights/offsets are re-visited (same block) every grid step; the
    # default double-buffering of these small constants costs only ~100 KB.

    out = pl.pallas_call(
        tfac_encoder_kernel,
        out_shape=jax.ShapeDtypeStruct((B, 128), jnp.float32),
        grid_spec=pltpu.PrefetchScalarGridSpec(
            num_scalar_prefetch=0,
            grid=grid,
            in_specs=in_specs,
            out_specs=pl.BlockSpec((TB, 128), lambda b: (b, 0)),
        ),
        compiler_params=pltpu.CompilerParams(
            dimension_semantics=("parallel",),
            vmem_limit_bytes=int((vmem_cap * 3) // 4),
        ),
    )(x_taps, w1, o1, w2, o2, w3, o3)
    return out


def ref_forward(x_ncl, params):
    """Pure-JAX reference of the encoder forward pass (f32)."""
    h = jnp.transpose(x_ncl, (0, 2, 1))               # (B, L, Cin)
    for (w, bias, gamma, beta, mean, var) in params:
        w_k = jnp.transpose(w, (2, 1, 0))             # (3, Cin, Cout)
        hp = jnp.pad(h, ((0, 0), (1, 1), (0, 0)))
        L = h.shape[1]
        y = (jnp.einsum("blc,cd->bld", hp[:, 0:L], w_k[0])
             + jnp.einsum("blc,cd->bld", hp[:, 1:L + 1], w_k[1])
             + jnp.einsum("blc,cd->bld", hp[:, 2:L + 2], w_k[2]))
        y = y + bias
        y = gamma * (y - mean) / jnp.sqrt(var + _EPS) + beta
        h = jnp.maximum(y, 0.0)
    return jnp.mean(h, axis=1)                        # (B, 128)


def init_params(key, cin):
    """Deterministic init of conv + batchnorm params for the 3 encoder layers."""
    params = []
    chans = [cin, 32, 64, 128]
    for i in range(3):
        ci, co = chans[i], chans[i + 1]
        key, k1, k2, k3, k4, k5, k6 = jax.random.split(key, 7)
        w = jax.random.normal(k1, (co, ci, 3), jnp.float32) * 0.1      # Conv1d weight
        bias = jax.random.normal(k2, (co,), jnp.float32) * 0.1         # Conv1d bias
        gamma = 1.0 + 0.1 * jax.random.normal(k3, (co,), jnp.float32)  # BN weight
        beta = 0.1 * jax.random.normal(k4, (co,), jnp.float32)         # BN bias
        mean = 0.1 * jax.random.normal(k5, (co,), jnp.float32)         # BN running_mean
        var = 1.0 + 0.1 * jax.random.uniform(k6, (co,), jnp.float32)   # BN running_var
        params.append((w, bias, gamma, beta, mean, var))
    return params


if __name__ == "__main__":
    key = jax.random.PRNGKey(0)

    # Small shapes (NCL layout). The last case (B=16, L=64) exercises a
    # multi-step grid (TB=8, 2 grid steps).
    for (B, CIN, L) in [(2, 4, 16), (8, 4, 16), (16, 4, 64)]:
        key, kx, kp = jax.random.split(key, 3)
        x = jax.random.normal(kx, (B, CIN, L), jnp.float32)
        params = init_params(kp, CIN)
        ref = ref_forward(x, params)

        # f32 MXU-operand path: tight agreement with the reference.
        out_f32 = jax.block_until_ready(
            tfac_forward(x, params, compute_dtype=jnp.float32))
        np.testing.assert_allclose(np.asarray(out_f32), np.asarray(ref),
                                   rtol=1e-4, atol=1e-4)

        # bf16 MXU-operand path (default, fast on v6e/v7x): f32 accumulation,
        # looser tolerance reflecting bf16 operand quantization.
        out_bf16 = jax.block_until_ready(tfac_forward(x, params))
        np.testing.assert_allclose(np.asarray(out_bf16), np.asarray(ref),
                                   rtol=2e-2, atol=2e-2)

        assert out_f32.shape == (B, 128) and out_bf16.shape == (B, 128)

    # TODO(synk): classifier head / SinkhornDistance / Adam live in update(),
    # not in forward(), so they are intentionally not translated.
    print("KERNEL_OK")
</pallas_src>

<mosaic_0001>
module attributes {stable_mosaic.version = 11 : i64} {
  func.func @tfac_encoder_kernel(%arg0: i32, %arg1: memref<2x16x24xf32, #tpu.memory_space<vmem>>, %arg2: memref<24x32xf32, #tpu.memory_space<vmem>>, %arg3: memref<1x32xf32, #tpu.memory_space<vmem>>, %arg4: memref<3x32x64xf32, #tpu.memory_space<vmem>>, %arg5: memref<1x64xf32, #tpu.memory_space<vmem>>, %arg6: memref<3x64x128xf32, #tpu.memory_space<vmem>>, %arg7: memref<1x128xf32, #tpu.memory_space<vmem>>, %arg8: memref<2x128xf32, #tpu.memory_space<vmem>>) attributes {dimension_semantics = [#tpu.dimension_semantics<parallel>], iteration_bounds = array<i64: 1>, scalar_prefetch = 0 : i64, scratch_operands = 0 : i64, tpu.core_type = #tpu.core_type<tc>, window_params = [{transform_indices = @transform_0, window_bounds = array<i64: 2, 16, 24>}, {pipeline_mode = #tpu.pipeline_mode<synchronous>, transform_indices = @transform_1, window_bounds = array<i64: 24, 32>}, {pipeline_mode = #tpu.pipeline_mode<synchronous>, transform_indices = @transform_2, window_bounds = array<i64: 1, 32>}, {pipeline_mode = #tpu.pipeline_mode<synchronous>, transform_indices = @transform_3, window_bounds = array<i64: 3, 32, 64>}, {pipeline_mode = #tpu.pipeline_mode<synchronous>, transform_indices = @transform_4, window_bounds = array<i64: 1, 64>}, {pipeline_mode = #tpu.pipeline_mode<synchronous>, transform_indices = @transform_5, window_bounds = array<i64: 3, 64, 128>}, {pipeline_mode = #tpu.pipeline_mode<synchronous>, transform_indices = @transform_6, window_bounds = array<i64: 1, 128>}, {transform_indices = @transform_7, window_bounds = array<i64: 2, 128>}]} {
    %c0 = arith.constant 0 : index
    %c0_0 = arith.constant 0 : index
    %c0_1 = arith.constant 0 : index
    %0 = vector.load %arg1[%c0, %c0_0, %c0_1] : memref<2x16x24xf32, #tpu.memory_space<vmem>>, vector<2x16x24xf32>
    %1 = vector.shape_cast %0 : vector<2x16x24xf32> to vector<32x24xf32>
    %c0_2 = arith.constant 0 : index
    %c0_3 = arith.constant 0 : index
    %2 = vector.load %arg2[%c0_2, %c0_3] : memref<24x32xf32, #tpu.memory_space<vmem>>, vector<24x32xf32>
    %cst = arith.constant dense<0.000000e+00> : vector<32x32xf32>
    %3 = tpu.matmul %1, %2, %cst {dimension_numbers = #tpu.dot_dimension_numbers<[1], [0], [0], [1], [0, 0, 1, 1], [], []>} : vector<32x24xf32>, vector<24x32xf32>, vector<32x32xf32> -> vector<32x32xf32>
    %c0_4 = arith.constant 0 : index
    %c0_5 = arith.constant 0 : index
    %4 = vector.load %arg3[%c0_4, %c0_5] : memref<1x32xf32, #tpu.memory_space<vmem>>, vector<1x32xf32>
    %5 = vector.broadcast %4 : vector<1x32xf32> to vector<32x32xf32>
    %6 = arith.addf %3, %5 : vector<32x32xf32>
    %cst_6 = arith.constant 0.000000e+00 : f32
    %7 = vector.broadcast %cst_6 : f32 to vector<32x32xf32>
    %8 = arith.maximumf %6, %7 : vector<32x32xf32>
    %9 = tpu.iota {dimensions = array<i32: 0>} : vector<32x1xi32>
    %c16_i32 = arith.constant 16 : i32
    %c0_i32 = arith.constant 0 : i32
    %10 = arith.cmpi eq, %c16_i32, %c0_i32 : i32
    %c1_i32 = arith.constant 1 : i32
    %11 = arith.select %10, %c1_i32, %c16_i32 : i32
    %12 = vector.broadcast %11 : i32 to vector<32x1xi32>
    %13 = arith.remsi %9, %12 : vector<32x1xi32>
    %c0_i32_7 = arith.constant 0 : i32
    %14 = vector.broadcast %c0_i32_7 : i32 to vector<32x1xi32>
    %15 = arith.cmpi ne, %13, %14 : vector<32x1xi32>
    %c0_i32_8 = arith.constant 0 : i32
    %16 = vector.broadcast %c0_i32_8 : i32 to vector<32x1xi32>
    %17 = arith.cmpi slt, %13, %16 : vector<32x1xi32>
    %c0_i32_9 = arith.constant 0 : i32
    %18 = arith.cmpi slt, %11, %c0_i32_9 : i32
    %19 = vector.broadcast %18 : i1 to vector<32x1xi1>
    %20 = vector.broadcast %19 : vector<32x1xi1> to vector<32x1xi1>
    %21 = arith.xori %17, %20 : vector<32x1xi1>
    %22 = arith.andi %21, %15 : vector<32x1xi1>
    %23 = vector.broadcast %11 : i32 to vector<32x1xi32>
    %24 = arith.addi %13, %23 : vector<32x1xi32>
    %25 = arith.select %22, %24, %13 : vector<32x1xi1>, vector<32x1xi32>
    %c0_i32_10 = arith.constant 0 : i32
    %26 = vector.broadcast %c0_i32_10 : i32 to vector<32x1xi32>
    %27 = arith.cmpi eq, %25, %26 : vector<32x1xi32>
    %c15_i32 = arith.constant 15 : i32
    %28 = vector.broadcast %c15_i32 : i32 to vector<32x1xi32>
    %29 = arith.cmpi eq, %25, %28 : vector<32x1xi32>
    %30 = vector.extract_strided_slice %8 {offsets = [31, 0], sizes = [1, 32], strides = [1, 1]} : vector<32x32xf32> to vector<1x32xf32>
    %31 = vector.extract_strided_slice %8 {offsets = [0, 0], sizes = [31, 32], strides = [1, 1]} : vector<32x32xf32> to vector<31x32xf32>
    %32 = tpu.concatenate %30, %31 in 0 : vector<1x32xf32>, vector<31x32xf32> -> vector<32x32xf32>
    %cst_11 = arith.constant 0.000000e+00 : f32
    %33 = vector.shape_cast %27 : vector<32x1xi1> to vector<32x1xi1>
    %34 = vector.broadcast %33 : vector<32x1xi1> to vector<32x32xi1>
    %35 = vector.broadcast %cst_11 : f32 to vector<32x32xf32>
    %36 = arith.select %34, %35, %32 : vector<32x32xi1>, vector<32x32xf32>
    %37 = vector.extract_strided_slice %8 {offsets = [1, 0], sizes = [31, 32], strides = [1, 1]} : vector<32x32xf32> to vector<31x32xf32>
    %38 = vector.extract_strided_slice %8 {offsets = [0, 0], sizes = [1, 32], strides = [1, 1]} : vector<32x32xf32> to vector<1x32xf32>
    %39 = tpu.concatenate %37, %38 in 0 : vector<31x32xf32>, vector<1x32xf32> -> vector<32x32xf32>
    %cst_12 = arith.constant 0.000000e+00 : f32
    %40 = vector.shape_cast %29 : vector<32x1xi1> to vector<32x1xi1>
    %41 = vector.broadcast %40 : vector<32x1xi1> to vector<32x32xi1>
    %42 = vector.broadcast %cst_12 : f32 to vector<32x32xf32>
    %43 = arith.select %41, %42, %39 : vector<32x32xi1>, vector<32x32xf32>
    %c0_13 = arith.constant 0 : index
    %c0_14 = arith.constant 0 : index
    %c0_15 = arith.constant 0 : index
    %44 = vector.load %arg4[%c0_13, %c0_14, %c0_15] : memref<3x32x64xf32, #tpu.memory_space<vmem>>, vector<1x32x64xf32>
    %45 = vector.shape_cast %44 : vector<1x32x64xf32> to vector<32x64xf32>
    %cst_16 = arith.constant dense<0.000000e+00> : vector<32x64xf32>
    %46 = tpu.matmul %36, %45, %cst_16 {dimension_numbers = #tpu.dot_dimension_numbers<[1], [0], [0], [1], [0, 0, 1, 1], [], []>} : vector<32x32xf32>, vector<32x64xf32>, vector<32x64xf32> -> vector<32x64xf32>
    %c1 = arith.constant 1 : index
    %c0_17 = arith.constant 0 : index
    %c0_18 = arith.constant 0 : index
    %47 = vector.load %arg4[%c1, %c0_17, %c0_18] : memref<3x32x64xf32, #tpu.memory_space<vmem>>, vector<1x32x64xf32>
    %48 = vector.shape_cast %47 : vector<1x32x64xf32> to vector<32x64xf32>
    %cst_19 = arith.constant dense<0.000000e+00> : vector<32x64xf32>
    %49 = tpu.matmul %8, %48, %cst_19 {dimension_numbers = #tpu.dot_dimension_numbers<[1], [0], [0], [1], [0, 0, 1, 1], [], []>} : vector<32x32xf32>, vector<32x64xf32>, vector<32x64xf32> -> vector<32x64xf32>
    %50 = arith.addf %46, %49 : vector<32x64xf32>
    %c2 = arith.constant 2 : index
    %c0_20 = arith.constant 0 : index
    %c0_21 = arith.constant 0 : index
    %51 = vector.load %arg4[%c2, %c0_20, %c0_21] : memref<3x32x64xf32, #tpu.memory_space<vmem>>, vector<1x32x64xf32>
    %52 = vector.shape_cast %51 : vector<1x32x64xf32> to vector<32x64xf32>
    %cst_22 = arith.constant dense<0.000000e+00> : vector<32x64xf32>
    %53 = tpu.matmul %43, %52, %cst_22 {dimension_numbers = #tpu.dot_dimension_numbers<[1], [0], [0], [1], [0, 0, 1, 1], [], []>} : vector<32x32xf32>, vector<32x64xf32>, vector<32x64xf32> -> vector<32x64xf32>
    %54 = arith.addf %50, %53 : vector<32x64xf32>
    %c0_23 = arith.constant 0 : index
    %c0_24 = arith.constant 0 : index
    %55 = vector.load %arg5[%c0_23, %c0_24] : memref<1x64xf32, #tpu.memory_space<vmem>>, vector<1x64xf32>
    %56 = vector.broadcast %55 : vector<1x64xf32> to vector<32x64xf32>
    %57 = arith.addf %54, %56 : vector<32x64xf32>
    %cst_25 = arith.constant 0.000000e+00 : f32
    %58 = vector.broadcast %cst_25 : f32 to vector<32x64xf32>
    %59 = arith.maximumf %57, %58 : vector<32x64xf32>
    %60 = vector.extract_strided_slice %59 {offsets = [31, 0], sizes = [1, 64], strides = [1, 1]} : vector<32x64xf32> to vector<1x64xf32>
    %61 = vector.extract_strided_slice %59 {offsets = [0, 0], sizes = [31, 64], strides = [1, 1]} : vector<32x64xf32> to vector<31x64xf32>
    %62 = tpu.concatenate %60, %61 in 0 : vector<1x64xf32>, vector<31x64xf32> -> vector<32x64xf32>
    %cst_26 = arith.constant 0.000000e+00 : f32
    %63 = vector.shape_cast %27 : vector<32x1xi1> to vector<32x1xi1>
    %64 = vector.broadcast %63 : vector<32x1xi1> to vector<32x64xi1>
    %65 = vector.broadcast %cst_26 : f32 to vector<32x64xf32>
    %66 = arith.select %64, %65, %62 : vector<32x64xi1>, vector<32x64xf32>
    %67 = vector.extract_strided_slice %59 {offsets = [1, 0], sizes = [31, 64], strides = [1, 1]} : vector<32x64xf32> to vector<31x64xf32>
    %68 = vector.extract_strided_slice %59 {offsets = [0, 0], sizes = [1, 64], strides = [1, 1]} : vector<32x64xf32> to vector<1x64xf32>
    %69 = tpu.concatenate %67, %68 in 0 : vector<31x64xf32>, vector<1x64xf32> -> vector<32x64xf32>
    %cst_27 = arith.constant 0.000000e+00 : f32
    %70 = vector.shape_cast %29 : vector<32x1xi1> to vector<32x1xi1>
    %71 = vector.broadcast %70 : vector<32x1xi1> to vector<32x64xi1>
    %72 = vector.broadcast %cst_27 : f32 to vector<32x64xf32>
    %73 = arith.select %71, %72, %69 : vector<32x64xi1>, vector<32x64xf32>
    %c0_28 = arith.constant 0 : index
    %c0_29 = arith.constant 0 : index
    %c0_30 = arith.constant 0 : index
    %74 = vector.load %arg6[%c0_28, %c0_29, %c0_30] : memref<3x64x128xf32, #tpu.memory_space<vmem>>, vector<1x64x128xf32>
    %75 = vector.shape_cast %74 : vector<1x64x128xf32> to vector<64x128xf32>
    %cst_31 = arith.constant dense<0.000000e+00> : vector<32x128xf32>
    %76 = tpu.matmul %66, %75, %cst_31 {dimension_numbers = #tpu.dot_dimension_numbers<[1], [0], [0], [1], [0, 0, 1, 1], [], []>} : vector<32x64xf32>, vector<64x128xf32>, vector<32x128xf32> -> vector<32x128xf32>
    %c1_32 = arith.constant 1 : index
    %c0_33 = arith.constant 0 : index
    %c0_34 = arith.constant 0 : index
    %77 = vector.load %arg6[%c1_32, %c0_33, %c0_34] : memref<3x64x128xf32, #tpu.memory_space<vmem>>, vector<1x64x128xf32>
    %78 = vector.shape_cast %77 : vector<1x64x128xf32> to vector<64x128xf32>
    %cst_35 = arith.constant dense<0.000000e+00> : vector<32x128xf32>
    %79 = tpu.matmul %59, %78, %cst_35 {dimension_numbers = #tpu.dot_dimension_numbers<[1], [0], [0], [1], [0, 0, 1, 1], [], []>} : vector<32x64xf32>, vector<64x128xf32>, vector<32x128xf32> -> vector<32x128xf32>
    %80 = arith.addf %76, %79 : vector<32x128xf32>
    %c2_36 = arith.constant 2 : index
    %c0_37 = arith.constant 0 : index
    %c0_38 = arith.constant 0 : index
    %81 = vector.load %arg6[%c2_36, %c0_37, %c0_38] : memref<3x64x128xf32, #tpu.memory_space<vmem>>, vector<1x64x128xf32>
    %82 = vector.shape_cast %81 : vector<1x64x128xf32> to vector<64x128xf32>
    %cst_39 = arith.constant dense<0.000000e+00> : vector<32x128xf32>
    %83 = tpu.matmul %73, %82, %cst_39 {dimension_numbers = #tpu.dot_dimension_numbers<[1], [0], [0], [1], [0, 0, 1, 1], [], []>} : vector<32x64xf32>, vector<64x128xf32>, vector<32x128xf32> -> vector<32x128xf32>
    %84 = arith.addf %80, %83 : vector<32x128xf32>
    %c0_40 = arith.constant 0 : index
    %c0_41 = arith.constant 0 : index
    %85 = vector.load %arg7[%c0_40, %c0_41] : memref<1x128xf32, #tpu.memory_space<vmem>>, vector<1x128xf32>
    %86 = vector.broadcast %85 : vector<1x128xf32> to vector<32x128xf32>
    %87 = arith.addf %84, %86 : vector<32x128xf32>
    %cst_42 = arith.constant 0.000000e+00 : f32
    %88 = vector.broadcast %cst_42 : f32 to vector<32x128xf32>
    %89 = arith.maximumf %87, %88 : vector<32x128xf32>
    %90 = vector.shape_cast %89 : vector<32x128xf32> to vector<2x16x128xf32>
    %cst_43 = arith.constant dense<0.000000e+00> : vector<2x128xf32>
    %91 = vector.multi_reduction <add>, %90, %cst_43 [1] : vector<2x16x128xf32> to vector<2x128xf32>
    %cst_44 = arith.constant 6.250000e-02 : f32
    %92 = vector.broadcast %cst_44 : f32 to vector<2x128xf32>
    %93 = arith.mulf %91, %92 : vector<2x128xf32>
    %c0_45 = arith.constant 0 : index
    %c0_46 = arith.constant 0 : index
    %94 = vector.load %arg8[%c0_45, %c0_46] : memref<2x128xf32, #tpu.memory_space<vmem>>, vector<2x128xf32>
    tpu.vector_store %arg8[%c0_45, %c0_46], %93 {strides = array<i32>} : memref<2x128xf32, #tpu.memory_space<vmem>>, vector<2x128xf32>,
    return
  }
  func.func @transform_0(%arg0: i32) -> (i32, i32, i32) {
    %c0_i32 = arith.constant 0 : i32
    %c0_i32_0 = arith.constant 0 : i32
    %c0_i32_1 = arith.constant 0 : i32
    return %arg0, %c0_i32, %c0_i32_0 : i32, i32, i32
  }
  func.func @transform_1(%arg0: i32) -> (i32, i32) {
    %c0_i32 = arith.constant 0 : i32
    %c0_i32_0 = arith.constant 0 : i32
    %c0_i32_1 = arith.constant 0 : i32
    return %c0_i32, %c0_i32_0 : i32, i32
  }
  func.func @transform_2(%arg0: i32) -> (i32, i32) {
    %c0_i32 = arith.constant 0 : i32
    %c0_i32_0 = arith.constant 0 : i32
    %c0_i32_1 = arith.constant 0 : i32
    return %c0_i32, %c0_i32_0 : i32, i32
  }
  func.func @transform_3(%arg0: i32) -> (i32, i32, i32) {
    %c0_i32 = arith.constant 0 : i32
    %c0_i32_0 = arith.constant 0 : i32
    %c0_i32_1 = arith.constant 0 : i32
    %c0_i32_2 = arith.constant 0 : i32
    return %c0_i32, %c0_i32_0, %c0_i32_1 : i32, i32, i32
  }
  func.func @transform_4(%arg0: i32) -> (i32, i32) {
    %c0_i32 = arith.constant 0 : i32
    %c0_i32_0 = arith.constant 0 : i32
    %c0_i32_1 = arith.constant 0 : i32
    return %c0_i32, %c0_i32_0 : i32, i32
  }
  func.func @transform_5(%arg0: i32) -> (i32, i32, i32) {
    %c0_i32 = arith.constant 0 : i32
    %c0_i32_0 = arith.constant 0 : i32
    %c0_i32_1 = arith.constant 0 : i32
    %c0_i32_2 = arith.constant 0 : i32
    return %c0_i32, %c0_i32_0, %c0_i32_1 : i32, i32, i32
  }
  func.func @transform_6(%arg0: i32) -> (i32, i32) {
    %c0_i32 = arith.constant 0 : i32
    %c0_i32_0 = arith.constant 0 : i32
    %c0_i32_1 = arith.constant 0 : i32
    return %c0_i32, %c0_i32_0 : i32, i32
  }
  func.func @transform_7(%arg0: i32) -> (i32, i32) {
    %c0_i32 = arith.constant 0 : i32
    %c0_i32_0 = arith.constant 0 : i32
    return %arg0, %c0_i32 : i32, i32
  }
}

</mosaic_0001>

<bundles_post_ra>
// kernel: tpu_custom_call.1
= control target key start
LH: loop header
LB: loop body
LE: loop exit
PB: predicated region body
PF: predicated region fallthrough
CT: control target
= control target key end

     0   :  { %12 = vsyncpa [#allocation3], 0  ;;  %s1538_s0 = inlined_call_operand.hbm [shape: f32[2,16,24], index: 0, kind: input, shape index: {}]   ;;  %s1539_s1 = inlined_call_operand.hbm [shape: f32[24,32], index: 1, kind: input, shape index: {}]   ;;  %s1540_s2 = inlined_call_operand.vmem [shape: f32[1,32], index: 2, kind: input, shape index: {}]   ;;  %s1541_s3 = inlined_call_operand.hbm [shape: f32[3,32,64], index: 3, kind: input, shape index: {}]   ;;  %s1542_s4 = inlined_call_operand.vmem [shape: f32[1,64], index: 4, kind: input, shape index: {}]   ;;  %s1543_s5 = inlined_call_operand.hbm [shape: f32[3,64,128], index: 5, kind: input, shape index: {}]   ;;  %s1544_s6 = inlined_call_operand.vmem [shape: f32[1,128], index: 6, kind: input, shape index: {}]   ;;  %s1545_s7 = inlined_call_operand.hbm [shape: f32[2,128], index: 7, kind: output, shape index: {}]  }
   0x1   :  { %13 = vsyncpa [#allocation6], 0 }
   0x2   :  { %14 = vsyncpa [#allocation9], 0 }
   0x3   :  { %15 = vsyncpa [#allocation4], 0  ;;  %s1379_s24 = smov [#allocation5]   ;;  %s1380_s26 = smov [#allocation2]  }
   0x4   :  { %s33_s25 = sshll.u32 %s1379_s24, 4  ;;  %s21_s27 = sshll.u32 %s1380_s26, 4  ;;  %s34_s25 = int_to_ptr.vmem [resolvable:$true] %s33_s25  ;;  %s22_s27 = int_to_ptr.vmem [resolvable:$true] %s21_s27 }
   0x5   :  { %s1279_s28 = scalar_lea.vmem %s34_s25, 384  ;;  %p1284_p1 = scmp.lt.s32.totalorder %s34_s25, %s34_s25 }
   0x6   :  { %p1280_p0 = scmp.ne.s32.totalorder %s34_s25, %s1279_s28  ;;  %p1285_p2 = scmp.lt.s32.totalorder %s1279_s28, %s1279_s28 }
   0x8   :  { %p1286_p3 = por %p1285_p2, %p1284_p1 }
   0xa   :  { %p1287_p4 = pnand %p1286_p3, %p1280_p0 }
   0xc   :  { %1290 = shalt.err (!%p1287_p4)
}
   0xd   :  { %s1381_s29 = smov 128   ;;  %s1382_s30 = smov 8  }
   0xe   :  { %39 = dma.hbm_to_vmem [thread:$0]  %s1539_s1, 384, %s34_s25, [#allocation6], %s1381_s29, %s1381_s29, %s1382_s30  }
   0xf   :  { %s1299_s10 = scalar_lea.vmem %s22_s27, 512  ;;  %p1304_p6 = scmp.lt.s32.totalorder %s22_s27, %s22_s27 }
  0x10   :  { %p1300_p5 = scmp.ne.s32.totalorder %s22_s27, %s1299_s10  ;;  %p1305_p7 = scmp.lt.s32.totalorder %s1299_s10, %s1299_s10 }
  0x12   :  { %p1306_p8 = por %p1305_p7, %p1304_p6 }
  0x14   :  { %p1307_p9 = pnand %p1306_p8, %p1300_p5 }
  0x16   :  { %1310 = shalt.err (!%p1307_p9)
}
  0x17   :  { %27 = dma.hbm_to_vmem [thread:$0]  %s1538_s0, 512, %s22_s27, [#allocation3], %s1381_s29, %s1381_s29, %s1382_s30  }
  0x18   :  { %s1383_s13 = smov [#allocation7]   ;;  %s1384_s15 = smov [#allocation8]  }
  0x19   :  { %s47_s14 = sshll.u32 %s1383_s13, 4  ;;  %s61_s16 = sshll.u32 %s1384_s15, 4  ;;  %s48_s14 = int_to_ptr.vmem [resolvable:$true] %s47_s14  ;;  %s62_s16 = int_to_ptr.vmem [resolvable:$true] %s61_s16 }
  0x1a   :  { %s1319_s1 = scalar_lea.vmem %s48_s14, 1536  ;;  %p1324_p11 = scmp.lt.s32.totalorder %s48_s14, %s48_s14 }
  0x1b   :  { %p1320_p10 = scmp.ne.s32.totalorder %s48_s14, %s1319_s1  ;;  %p1325_p12 = scmp.lt.s32.totalorder %s1319_s1, %s1319_s1 }
  0x1d   :  { %p1326_p13 = por %p1325_p12, %p1324_p11 }
  0x1f   :  { %p1327_p0 = pnand %p1326_p13, %p1320_p10 }
  0x21   :  { %1330 = shalt.err (!%p1327_p0)
}
  0x22   :  { %53 = dma.hbm_to_vmem [thread:$0]  %s1541_s3, 1536, %s48_s14, [#allocation6], %s1381_s29, %s1381_s29, %s1382_s30  }
  0x23   :  { %s1339_s0 = scalar_lea.vmem %s62_s16, 3072  ;;  %p1344_p2 = scmp.lt.s32.totalorder %s62_s16, %s62_s16 }
  0x24   :  { %p1340_p1 = scmp.ne.s32.totalorder %s62_s16, %s1339_s0  ;;  %p1345_p3 = scmp.lt.s32.totalorder %s1339_s0, %s1339_s0 }
  0x26   :  { %p1346_p4 = por %p1345_p3, %p1344_p2 }
  0x28   :  { %p1347_p5 = pnand %p1346_p4, %p1340_p1 }
  0x2a   :  { %1350 = shalt.err (!%p1347_p5)
}
  0x2b   :  { %67 = dma.hbm_to_vmem [thread:$0]  %s1543_s5, 3072, %s62_s16, [#allocation9], %s1381_s29, %s1381_s29, %s1382_s30  }
  0x2c   :  { %1371 = dma.done.wait [#allocation3], 512  }
  0x2d   :  { %1372 = vsyncadd [#allocation3], 4294966784 }
  0x2e   :  { %1373 = dma.done.wait [#allocation6], 1920  }
  0x2f   :  { %1374 = vsyncadd [#allocation6], 4294965376 }
  0x30   :  { %1375 = dma.done.wait [#allocation9], 3072  }
  0x31   :  { %1376 = vsyncadd [#allocation9], 4294964224  ;;  %vm96_vm0 = vcmask 195584   ;;  %v88_v0 = vld [vmem:[#allocation5 + $0x10] sm:$0xff]  ;;  %v87_v1 = vld [vmem:[#allocation5 + $0x8] sm:$0xff]  ;;  %v198_v16 = vlaneseq  ;;  %vm324_vm1 = vcmask 261120  }
  0x32   :  { %1144 = vmatprep.subr.mxu1 %v88_v0  ;;  %v82_v2 = vld [vmem:[#allocation2] sm:$0xff]  ;;  %v83_v4 = vld [vmem:[#allocation2 + $0x8] sm:$0xff]  ;;  %v323_v5 = vld [vmem:[#allocation7 + $0x38] sm:$0xff]  ;;  %vm265_vm3 = vcmask 1040384   ;;  %vm289_vm4 = vcmask 1046528   ;;  %vm691_vm8 = vcmask 523264  }
  0x33   :  { %1145 = vmatpush3.msra.mxu1 %v88_v0  ;;  %v86_v3 = vld [vmem:[#allocation5] sm:$0xff]  ;;  %1150 = vmatprep.mubr.msk.f32.mxu1 %vm96_vm0, %v82_v2  ;;  %v84_v6 = vld [vmem:[#allocation2 + $0x10] sm:$0xff]  ;;  %v85_v7 = vld [vmem:[#allocation2 + $0x18] sm:$0xff]  ;;  %v199_v19 = vshrl.u32 %v198_v16, 7  ;;  %vm1025_vm9 = vcmask 1041409  }
  0x34   :  { %1146 = vmatprep.subr.mxu1 %v87_v1  ;;  %v322_v8 = vld [vmem:[#allocation7 + $0x30] sm:$0xff]  ;;  %v321_v9 = vld [vmem:[#allocation7 + $0x28] sm:$0xff]  ;;  %v320_v10 = vld [vmem:[#allocation7 + $0x20] sm:$0xff] }
  0x35   :  { %1147 = vmatpush3.msra.mxu1 %v87_v1  ;;  %v318_v11 = vld [vmem:[#allocation7 + $0x18] sm:$0xff]  ;;  %v317_v13 = vld [vmem:[#allocation7 + $0x10] sm:$0xff]  ;;  %v316_v14 = vld [vmem:[#allocation7 + $0x8] sm:$0xff]  ;;  %v201_v22 = vadd.s32 16, %v199_v19  ;;  %v200_v23 = vadd.s32 8, %v199_v19  ;;  %v207_v26 = vand.u32 15, %v199_v19 }
  0x36   :  { %1148 = vmatprep.subr.mxu1 %v86_v3  ;;  %1170 = vmatprep.subr.mxu0 %v318_v11  ;;  %v519_v12 = vld [vmem:[#allocation7 + $0x58] sm:$0xff]  ;;  %v315_v15 = vld [vmem:[#allocation7] sm:$0xff]  ;;  %v1046_v17 = vld [vmem:[%s1540_s2] ss:$0 sm:$0xff]  ;;  %v202_v37 = vadd.s32 24, %v199_v19 }
  0x37   :  { %1149 = vmatpush3.msra.mxu1 %v86_v3  ;;  %1171 = vmatpush3.msra.mxu0 %v318_v11  ;;  %v221_v31 = vand.u32 15, %v201_v22  ;;  %v214_v32 = vand.u32 15, %v200_v23  ;;  %v518_v35 = vld [vmem:[#allocation7 + $0x50] sm:$0xff]  ;;  %vm1459_vm2 = vcmp.eq.s32.totalorder %v207_v26, 0  ;;  %v517_v42 = vld [vmem:[#allocation7 + $0x48] sm:$0xff]  ;;  %v516_v50 = vld [vmem:[#allocation7 + $0x40] sm:$0xff] }
  0x38   :  { %1151 = vmatmul.mubr.msk.f32.vlgmr.msra.gmra.mxu1 %vm96_vm0, %v83_v4  ;;  %1156 = vmatprep.subr.mxu1 %v323_v5  ;;  %v228_v53 = vand.u32 15, %v202_v37  ;;  %v690_v1 = vld [vmem:[#allocation8 + $0x78] sm:$0xff]  ;;  %v689_v2 = vld [vmem:[#allocation8 + $0x70] sm:$0xff]  ;;  %v688_v3 = vld [vmem:[#allocation8 + $0x68] sm:$0xff] }
  0x39   :  { %1153 = vmatprep.mubr.msk.f32.mxu1 %vm96_vm0, %v84_v6  ;;  %1157 = vmatpush3.msra.mxu1 %v323_v5  ;;  %vm1463_vm5 = vcmp.eq.s32.totalorder %v221_v31, 0  ;;  %vm1467_vm6 = vcmp.eq.s32.totalorder %v214_v32, 15  ;;  %v687_v4 = vld [vmem:[#allocation8 + $0x60] sm:$0xff]  ;;  %v681_v5 = vld [vmem:[#allocation8 + $0x38] sm:$0xff]  ;;  %v675_v16 = vld [vmem:[#allocation8 + $0x8] sm:$0xff] }
  0x3a   :  { %1158 = vmatprep.subr.mxu1 %v322_v8  ;;  %1172 = vmatprep.subr.mxu0 %v317_v13  ;;  %vm1490_vm7 = vcmp.eq.s32.totalorder %v228_v53, 15  ;;  %v686_v6 = vld [vmem:[#allocation8 + $0x58] sm:$0xff]  ;;  %v678_v11 = vld [vmem:[#allocation8 + $0x20] sm:$0xff]  ;;  %v888_v53 = vld [vmem:[#allocation8 + $0xa8] sm:$0xff] }
  0x3b   :  { %1159 = vmatpush3.msra.mxu1 %v322_v8  ;;  %1173 = vmatpush3.msra.mxu0 %v317_v13  ;;  %v685_v8 = vld [vmem:[#allocation8 + $0x50] sm:$0xff]  ;;  %v677_v13 = vld [vmem:[#allocation8 + $0x18] sm:$0xff] }
  0x3c   :  { %1154 = vmatmul.mubr.msk.f32.gmra.mxu1 %vm96_vm0, %v85_v7  ;;  %1160 = vmatprep.subr.mxu1 %v321_v9  ;;  %v680_v7 = vld [vmem:[#allocation8 + $0x30] sm:$0xff] }
  0x3d   :  { %1161 = vmatpush3.msra.mxu1 %v321_v9  ;;  %1174 = vmatprep.subr.mxu0 %v316_v14  ;;  %v679_v9 = vld [vmem:[#allocation8 + $0x28] sm:$0xff] }
  0x3e   :  { %1162 = vmatprep.subr.mxu1 %v320_v10  ;;  %1175 = vmatpush3.msra.mxu0 %v316_v14  ;;  %v890_v14 = vld [vmem:[#allocation8 + $0xb8] sm:$0xff] }
  0x3f   :  { %1163 = vmatpush3.msra.mxu1 %v320_v10  ;;  %1176 = vmatprep.subr.mxu0 %v315_v15  ;;  %v684_v10 = vld [vmem:[#allocation8 + $0x48] sm:$0xff] }
  0x40   :  { %1184 = vmatprep.subr.mxu1 %v519_v12  ;;  %1177 = vmatpush3.msra.mxu0 %v315_v15  ;;  %v676_v15 = vld [vmem:[#allocation8 + $0x10] sm:$0xff] }
  0x41   :  { %1198 = vmatprep.subr.mxu0 %v690_v1 }
  0xf8   :  { %v1152_v18 = vpop.f32.mrf.mxu1 }
  0xf9   :  { %v181_v20 = vadd.f32 %v1152_v18, %v1046_v17 }
  0xfa   :  { %v175_v21 = vpop.f32.mrf.mxu1 }
  0xfb   :  { %v176_v24 = vadd.f32 %v1046_v17, %v175_v21  ;;  %v195_v29 = vmax.f32 %v181_v20, 0.0 }
  0xfc   :  { %v1155_v25 = vpop.f32.mrf.mxu1 }
  0xfd   :  { %v194_v27 = vmax.f32 %v176_v24, 0.0  ;;  %v191_v28 = vadd.f32 %v1155_v25, %v1046_v17  ;;  %v267_v43 = vrot.slane %v195_v29, 7  ;;  %v291_v46 = vrot.slane %v195_v29, 1 }
  0xfe   :  { %v185_v30 = vpop.f32.mrf.mxu1 }
  0xff   :  { %v197_v33 = vmax.f32 %v191_v28, 0.0  ;;  %v186_v34 = vadd.f32 %v1046_v17, %v185_v30  ;;  %1164 = vmatprep.mubr.msk.f32.mxu1 %vm324_vm1, %v194_v27  ;;  %v266_v38 = vrot.slane %v194_v27, 7  ;;  %v290_v39 = vrot.slane %v194_v27, 1  ;;  %v674_v17 = vld [vmem:[#allocation8] sm:$0xff]  ;;  %v1063_v28 = vld [vmem:[%s1542_s4] ss:$0 sm:$0xff] }
 0x100   :  { %1165 = vmatmul.mubr.msk.f32.vlgmr.msra.gmra.mxu1 %vm324_vm1, %v195_v29 }
 0x101   :  { %v260_v40 = vrot.slane %v197_v33, 7  ;;  %v196_v41 = vmax.f32 %v186_v34, 0.0  ;;  %1185 = vmatpush3.msra.mxu1 %v519_v12  ;;  %v295_v51 = vrot.slane %v197_v33, 1  ;;  %v292_v54 = vsel %vm289_vm4, %v290_v39, %v291_v46  ;;  %v683_v12 = vld [vmem:[#allocation8 + $0x40] sm:$0xff] }
 0x102   :  { %1186 = vmatprep.subr.mxu1 %v518_v35  ;;  %v268_v57 = vsel %vm265_vm3, %v266_v38, %v267_v43 }
 0x103   :  { %v269_v47 = vrot.slane %v196_v41, 7  ;;  %v293_v48 = vrot.slane %v196_v41, 1  ;;  %1187 = vmatpush3.msra.mxu1 %v518_v35  ;;  %1167 = vmatprep.mubr.msk.f32.mxu1 %vm324_vm1, %v196_v41  ;;  %v276_v49 = vsel %vm265_vm3, %v260_v40, %v266_v38  ;;  %v302_v62 = vsel %vm289_vm4, %v295_v51, %v290_v39 }
 0x104   :  { %1188 = vmatprep.subr.mxu1 %v517_v42  ;;  %1168 = vmatmul.mubr.msk.f32.gmra.mxu1 %vm324_vm1, %v197_v33  ;;  %v285_v52 = vsel %vm1459_vm2, 0.0, %v276_v49  ;;  %v314_v0 = vsel %vm1490_vm7, 0.0, %v302_v62 }
 0x105   :  { %1189 = vmatpush3.msra.mxu1 %v517_v42  ;;  %1178 = vmatprep.mubr.msk.f32.mxu0 %vm324_vm1, %v285_v52  ;;  %v270_v55 = vsel %vm265_vm3, %v267_v43, %v269_v47  ;;  %v294_v56 = vsel %vm289_vm4, %v291_v46, %v293_v48  ;;  %v296_v60 = vsel %vm289_vm4, %v293_v48, %v295_v51  ;;  %v889_v48 = vld [vmem:[#allocation8 + $0xb0] sm:$0xff] }
 0x106   :  { %1190 = vmatprep.subr.mxu1 %v516_v50  ;;  %1192 = vmatprep.mubr.msk.f32.mxu1 %vm324_vm1, %v292_v54  ;;  %v287_v58 = vsel %vm1463_vm5, 0.0, %v270_v55  ;;  %v312_v59 = vsel %vm1467_vm6, 0.0, %v294_v56  ;;  %v271_v63 = vsel %vm265_vm3, %v269_v47, %v260_v40 }
 0x107   :  { %1179 = vmatmul.mubr.msk.f32.vlgmr.msra.gmra.mxu0 %vm324_vm1, %v268_v57  ;;  %1191 = vmatpush3.msra.mxu1 %v516_v50 }
 0x108   :  { %1181 = vmatprep.mubr.msk.f32.mxu0 %vm324_vm1, %v287_v58  ;;  %1193 = vmatmul.mubr.msk.f32.vlgmr.msra.gmra.mxu1 %vm324_vm1, %v312_v59 }
 0x109   :  { %1195 = vmatprep.mubr.msk.f32.mxu1 %vm324_vm1, %v296_v60  ;;  %1199 = vmatpush3.msra.mxu0 %v690_v1  ;;  %v887_v60 = vld [vmem:[#allocation8 + $0xa0] sm:$0xff]  ;;  %v886_v1 = vld [vmem:[#allocation8 + $0x98] sm:$0xff] }
 0x10a   :  { %1200 = vmatprep.subr.mxu0 %v689_v2  ;;  %1220 = vmatprep.subr.mxu1 %v681_v5 }
 0x10b   :  { %1182 = vmatmul.mubr.msk.f32.gmra.mxu0 %vm324_vm1, %v271_v63  ;;  %1221 = vmatpush3.msra.mxu1 %v681_v5  ;;  %v884_v5 = vld [vmem:[#allocation8 + $0x88] sm:$0xff] }
 0x10c   :  { %1196 = vmatmul.mubr.msk.f32.gmra.mxu1 %vm324_vm1, %v314_v0  ;;  %1201 = vmatpush3.msra.mxu0 %v689_v2  ;;  %v885_v2 = vld [vmem:[#allocation8 + $0x90] sm:$0xff] }
 0x10d   :  { %1202 = vmatprep.subr.mxu0 %v688_v3  ;;  %1222 = vmatprep.subr.mxu1 %v680_v7 }
 0x10e   :  { %1203 = vmatpush3.msra.mxu0 %v688_v3  ;;  %1223 = vmatpush3.msra.mxu1 %v680_v7 }
 0x10f   :  { %1204 = vmatprep.subr.mxu0 %v687_v4  ;;  %1224 = vmatprep.subr.mxu1 %v679_v9 }
 0x110   :  { %1205 = vmatpush3.msra.mxu0 %v687_v4  ;;  %1225 = vmatpush3.msra.mxu1 %v679_v9 }
 0x111   :  { %1206 = vmatprep.subr.mxu0 %v686_v6  ;;  %1226 = vmatprep.subr.mxu1 %v678_v11 }
 0x112   :  { %1207 = vmatpush3.msra.mxu0 %v686_v6  ;;  %1227 = vmatpush3.msra.mxu1 %v678_v11  ;;  %v883_v6 = vld [vmem:[#allocation8 + $0x80] sm:$0xff] }
 0x113   :  { %1208 = vmatprep.subr.mxu0 %v685_v8  ;;  %1228 = vmatprep.subr.mxu1 %v677_v13 }
 0x114   :  { %1209 = vmatpush3.msra.mxu0 %v685_v8  ;;  %1229 = vmatpush3.msra.mxu1 %v677_v13 }
 0x115   :  { %1210 = vmatprep.subr.mxu0 %v684_v10  ;;  %1230 = vmatprep.subr.mxu1 %v676_v15 }
 0x116   :  { %1211 = vmatpush3.msra.mxu0 %v684_v10  ;;  %1231 = vmatpush3.msra.mxu1 %v676_v15 }
 0x117   :  { %1212 = vmatprep.subr.mxu0 %v683_v12  ;;  %1232 = vmatprep.subr.mxu1 %v675_v16 }
 0x118   :  { %1213 = vmatpush3.msra.mxu0 %v683_v12  ;;  %1233 = vmatpush3.msra.mxu1 %v675_v16 }
 0x119   :  { %1242 = vmatprep.subr.mxu0 %v890_v14  ;;  %1234 = vmatprep.subr.mxu1 %v674_v17 }
 0x11a   :  { %1235 = vmatpush3.msra.mxu1 %v674_v17 }
 0x1c0   :  { %v1166_v18 = vpop.f32.mrf.mxu1 }
 0x1c2   :  { %v399_v19 = vpop.f32.mrf.mxu1 }
 0x1c4   :  { %v1169_v20 = vpop.f32.mrf.mxu1 }
 0x1c6   :  { %v409_v21 = vpop.f32.mrf.mxu1 }
 0x1c7   :  { %v1180_v22 = vpop.f32.mrf.mxu0 }
 0x1c8   :  { %v502_v23 = vadd.f32 %v1180_v22, %v1166_v18  ;;  %v1194_v24 = vpop.f32.mrf.mxu1 }
 0x1c9   :  { %v496_v25 = vpop.f32.mrf.mxu0 }
 0x1ca   :  { %v497_v26 = vadd.f32 %v496_v25, %v399_v19  ;;  %v618_v27 = vadd.f32 %v1194_v24, %v502_v23  ;;  %v598_v29 = vpop.f32.mrf.mxu1 }
 0x1cb   :  { %v1183_v30 = vpop.f32.mrf.mxu0 }
 0x1cc   :  { %v512_v31 = vadd.f32 %v1183_v30, %v1169_v20  ;;  %v617_v32 = vadd.f32 %v598_v29, %v497_v26  ;;  %v1197_v33 = vpop.f32.mrf.mxu1  ;;  %v629_v34 = vadd.f32 %v1063_v28, %v618_v27  ;;  %v1076_v20 = vld [vmem:[%s1544_s6] ss:$0 sm:$0xff]  ;;  %s1385_s6 = smov [#allocation10]  }
 0x1cd   :  { %v506_v35 = vpop.f32.mrf.mxu0  ;;  %s1035_s23 = sshll.u32 %s1385_s6, 4  ;;  %s1036_s23 = int_to_ptr.vmem [resolvable:$true] %s1035_s23 }
 0x1ce   :  { %v628_v37 = vadd.f32 %v1063_v28, %v617_v32  ;;  %v507_v38 = vadd.f32 %v506_v35, %v409_v21  ;;  %v620_v39 = vadd.f32 %v1197_v33, %v512_v31  ;;  %v608_v40 = vpop.f32.mrf.mxu1  ;;  %v633_v43 = vmax.f32 %v629_v34, 0.0  ;;  %s1351_s24 = scalar_lea.vmem %s1036_s23, 32  ;;  %p1356_p7 = scmp.lt.s32.totalorder %s1036_s23, %s1036_s23 }
 0x1cf   :  { %p1352_p6 = scmp.ne.s32.totalorder %s1036_s23, %s1351_s24  ;;  %p1357_p8 = scmp.lt.s32.totalorder %s1351_s24, %s1351_s24 }
 0x1d0   :  { %v632_v41 = vmax.f32 %v628_v37, 0.0  ;;  %v631_v42 = vadd.f32 %v1063_v28, %v620_v39  ;;  %v619_v46 = vadd.f32 %v608_v40, %v507_v38  ;;  %v658_v55 = vrot.slane %v633_v43, 1 }
 0x1d1   :  { %v643_v57 = vrot.slane %v633_v43, 7  ;;  %p1358_p9 = por %p1357_p8, %p1356_p7 }
 0x1d2   :  { %v635_v47 = vmax.f32 %v631_v42, 0.0  ;;  %1214 = vmatprep.mubr.msk.f32.mxu0 %vm691_vm8, %v632_v41  ;;  %v630_v49 = vadd.f32 %v1063_v28, %v619_v46  ;;  %v642_v50 = vrot.slane %v632_v41, 7  ;;  %v657_v51 = vrot.slane %v632_v41, 1 }
 0x1d3   :  { %1215 = vmatmul.mubr.msk.f32.vlgmr.msra.gmra.mxu0 %vm691_vm8, %v633_v43  ;;  %p1359_p10 = pnand %p1358_p9, %p1352_p6 }
 0x1d4   :  { %v637_v52 = vrot.slane %v635_v47, 7  ;;  %1243 = vmatpush3.msra.mxu0 %v890_v14  ;;  %v634_v54 = vmax.f32 %v630_v49, 0.0  ;;  %v659_v62 = vsel %vm289_vm4, %v657_v51, %v658_v55  ;;  %v644_v63 = vsel %vm265_vm3, %v642_v50, %v643_v57 }
 0x1d5   :  { %1244 = vmatprep.subr.mxu0 %v889_v48  ;;  %v662_v7 = vrot.slane %v635_v47, 1 }
 0x1d6   :  { %1245 = vmatpush3.msra.mxu0 %v889_v48  ;;  %v652_v56 = vsel %vm265_vm3, %v637_v52, %v642_v50  ;;  %v645_v58 = vrot.slane %v634_v54, 7  ;;  %1217 = vmatprep.mubr.msk.f32.mxu0 %vm691_vm8, %v634_v54  ;;  %v660_v3 = vrot.slane %v634_v54, 1 }
 0x1d7   :  { %1246 = vmatprep.subr.mxu0 %v888_v53  ;;  %v653_v59 = vsel %vm1459_vm2, 0.0, %v652_v56  ;;  %1218 = vmatmul.mubr.msk.f32.gmra.mxu0 %vm691_vm8, %v635_v47  ;;  %v669_v10 = vsel %vm289_vm4, %v662_v7, %v657_v51 }
 0x1d8   :  { %1236 = vmatprep.mubr.msk.f32.mxu1 %vm691_vm8, %v653_v59  ;;  %1247 = vmatpush3.msra.mxu0 %v888_v53  ;;  %v646_v0 = vsel %vm265_vm3, %v643_v57, %v645_v58  ;;  %v647_v4 = vsel %vm265_vm3, %v645_v58, %v637_v52  ;;  %v661_v44 = vsel %vm289_vm4, %v658_v55, %v660_v3  ;;  %v673_v11 = vsel %vm1490_vm7, 0.0, %v669_v10 }
 0x1d9   :  { %1258 = vmatprep.mubr.msk.f32.mxu0 %vm691_vm8, %v659_v62  ;;  %1248 = vmatprep.subr.mxu0 %v887_v60  ;;  %v655_v36 = vsel %vm1463_vm5, 0.0, %v646_v0  ;;  %v671_v8 = vsel %vm1467_vm6, 0.0, %v661_v44  ;;  %v663_v9 = vsel %vm289_vm4, %v660_v3, %v662_v7 }
 0x1da   :  { %1237 = vmatmul.mubr.msk.f32.vlgmr.msra.gmra.mxu1 %vm691_vm8, %v644_v63  ;;  %1249 = vmatpush3.msra.mxu0 %v887_v60 }
 0x1db   :  { %1239 = vmatprep.mubr.msk.f32.mxu1 %vm691_vm8, %v655_v36  ;;  %1250 = vmatprep.subr.mxu0 %v886_v1 }
 0x1dc   :  { %1251 = vmatpush3.msra.mxu0 %v886_v1 }
 0x1dd   :  { %1252 = vmatprep.subr.mxu0 %v885_v2 }
 0x1de   :  { %1240 = vmatmul.mubr.msk.f32.gmra.mxu1 %vm691_vm8, %v647_v4  ;;  %1253 = vmatpush3.msra.mxu0 %v885_v2 }
 0x1df   :  { %1254 = vmatprep.subr.mxu0 %v884_v5 }
 0x1e0   :  { %1255 = vmatpush3.msra.mxu0 %v884_v5 }
 0x1e1   :  { %1256 = vmatprep.subr.mxu0 %v883_v6 }
 0x1e2   :  { %1257 = vmatpush3.msra.mxu0 %v883_v6 }
 0x1e3   :  { %1259 = vmatmul.mubr.msk.f32.vlgmr.msra.gmra.mxu0 %vm691_vm8, %v671_v8 }
 0x1e4   :  { %1261 = vmatprep.mubr.msk.f32.mxu0 %vm691_vm8, %v663_v9 }
 0x1e7   :  { %1262 = vmatmul.mubr.msk.f32.gmra.mxu0 %vm691_vm8, %v673_v11 }
 0x293   :  { %v1216_v12 = vpop.f32.mrf.mxu0 }
 0x295   :  { %v766_v13 = vpop.f32.mrf.mxu0 }
 0x297   :  { %v1219_v15 = vpop.f32.mrf.mxu0 }
 0x299   :  { %v776_v45 = vpop.f32.mrf.mxu0 }
 0x29a   :  { %v1238_v14 = vpop.f32.mrf.mxu1 }
 0x29b   :  { %v869_v18 = vadd.f32 %v1238_v14, %v1216_v12 }
 0x29c   :  { %v863_v16 = vpop.f32.mrf.mxu1 }
 0x29d   :  { %v864_v21 = vadd.f32 %v863_v16, %v766_v13 }
 0x29e   :  { %v1241_v17 = vpop.f32.mrf.mxu1 }
 0x29f   :  { %v879_v24 = vadd.f32 %v1241_v17, %v1219_v15 }
 0x2a0   :  { %v873_v23 = vpop.f32.mrf.mxu1 }
 0x2a1   :  { %v874_v28 = vadd.f32 %v873_v23, %v776_v45 }
 0x2a3   :  { %v1260_v19 = vpop.f32.mrf.mxu0 }
 0x2a4   :  { %v989_v22 = vadd.f32 %v1260_v19, %v869_v18 }
 0x2a5   :  { %v969_v61 = vpop.f32.mrf.mxu0 }
 0x2a6   :  { %v1000_v25 = vadd.f32 %v1076_v20, %v989_v22  ;;  %v988_v26 = vadd.f32 %v969_v61, %v864_v21 }
 0x2a7   :  { %v1263_v27 = vpop.f32.mrf.mxu0 }
 0x2a8   :  { %v999_v29 = vadd.f32 %v1076_v20, %v988_v26  ;;  %v991_v30 = vadd.f32 %v1263_v27, %v879_v24  ;;  %v1004_v32 = vmax.f32 %v1000_v25, 0.0 }
 0x2a9   :  { %v979_v31 = vpop.f32.mrf.mxu0 }
 0x2aa   :  { %v1003_v33 = vmax.f32 %v999_v29, 0.0  ;;  %v1002_v34 = vadd.f32 %v1076_v20, %v991_v30  ;;  %v990_v35 = vadd.f32 %v979_v31, %v874_v28 }
 0x2ac   :  { %v1007_v37 = vadd.f32 %v1004_v32, %v1003_v33  ;;  %v1001_v38 = vadd.f32 %v1076_v20, %v990_v35  ;;  %v1006_v40 = vmax.f32 %v1002_v34, 0.0 }
 0x2ae   :  { %v1008_v39 = vrot.slane %v1007_v37, 4  ;;  %v1005_v41 = vmax.f32 %v1001_v38, 0.0 }
 0x2b0   :  { %v1009_v42 = vadd.f32 %v1008_v39, %v1007_v37  ;;  %v1014_v43 = vadd.f32 %v1006_v40, %v1005_v41 }
 0x2b2   :  { %v1010_v46 = vrot.slane %v1009_v42, 2  ;;  %v1015_v47 = vrot.slane %v1014_v43, 4 }
 0x2b4   :  { %v1011_v48 = vadd.f32 %v1010_v46, %v1009_v42  ;;  %v1016_v49 = vadd.f32 %v1015_v47, %v1014_v43 }
 0x2b6   :  { %v1017_v50 = vrot.slane %v1016_v49, 2  ;;  %v1012_v51 = vrot.slane %v1011_v48, 1 }
 0x2b8   :  { %v1018_v52 = vadd.f32 %v1017_v50, %v1016_v49  ;;  %v1013_v53 = vadd.f32 %v1012_v51, %v1011_v48 }
 0x2ba   :  { %v1019_v54 = vrot.slane %v1018_v52, 1  ;;  %v1021_v56 = vmul.f32 0.0625, %v1013_v53 }
 0x2bc   :  { %v1020_v55 = vadd.f32 %v1019_v54, %v1018_v52 }
 0x2be   :  { %v1022_v57 = vmul.f32 0.0625, %v1020_v55 }
 0x2c0   :  { %v1026_v58 = vsel %vm1025_vm9, %v1022_v57, %v1021_v56 }
 0x2c1   :  { %1028 = vst [vmem:[#allocation10] sm:$0x3] %v1026_v58 }
 0x2c2   :  { %1362 = shalt.err (!%p1359_p10)
}
 0x2c3   :  { %1038 = dma.vmem_to_hbm [thread:$0]  %s1036_s23, 32, %s1545_s7, [#allocation4]  }
 0x2c4   :  { %1377 = dma.done.wait [#allocation4], 32  }
 0x2c5   :  { %1378 = vsyncadd [#allocation4], 4294967264 }
 0x2c6   :  { %1042 = vsyncpa [#allocation3], 1 }
 0x2c7   :  { %1043 = vsyncpa [#allocation6], 1 }
 0x2c8   :  { %1044 = vsyncpa [#allocation9], 1 }
 0x2c9   :  { %1045 = vsyncpa [#allocation4], 1 }

</bundles_post_ra>
